<compile_context>
chip_gen: v5e
topology: v5e:2x2
jax: 0.10.0
libtpu: 0.0.40
codegen_flags: <defaults>
</compile_context>

<pallas_src>
import functools

import jax
import jax.numpy as jnp
from jax.experimental import pallas as pl
from jax.experimental.pallas import tpu as pltpu

IN_FEATURES = 28 * 28   # 784 (multiple of 8 -> legal sublane dim, no K pad)
HIDDEN = 256
NUM_CLASSES = 10
OUT_PAD = 128           # lane-dense classifier output (do NOT shrink below 128)
NEG_BIG = -1e30         # bias for padded fake classes -> exp() == 0


def _round_up(x, m):
    return (x + m - 1) // m * m


def _activation(h, kind):
    if kind == "relu":
        return jnp.maximum(h, 0.0)
    elif kind == "tanh":
        return jnp.tanh(h)
    elif kind == "sigmoid":
        return jax.nn.sigmoid(h)
    raise ValueError("Invalid activation function")


def mlp_kernel(x_ref, w1_ref, b1_ref, w2_ref, b2_ref, w3_ref, b3_ref, o_ref,
               *, activation):
    # Cast streamed activations to bf16 in-kernel (VPU filler) for the MXU.
    x = x_ref[...].astype(jnp.bfloat16)

    # fc1: (TB, 784) bf16 @ (784, 256) bf16 -> f32 accumulate
    h = jnp.dot(x, w1_ref[...], preferred_element_type=jnp.float32)
    h = _activation(h + b1_ref[...], activation)

    # fc2: (TB, 256) @ (256, 256)
    h = jnp.dot(h.astype(w2_ref.dtype), w2_ref[...],
                preferred_element_type=jnp.float32)
    h = _activation(h + b2_ref[...], activation)

    # fc3: (TB, 256) @ (256, 128)  (classes padded to 128 lanes)
    logits = jnp.dot(h.astype(w3_ref.dtype), w3_ref[...],
                     preferred_element_type=jnp.float32)
    logits = logits + b3_ref[...]

    # Softmax over classes, all math in f32; padded classes have bias -1e30 so
    # exp() == 0 and the denominator equals the real 10-class denominator.
    m = jnp.max(logits, axis=1, keepdims=True)
    e = jnp.exp(logits - m)
    denom = jnp.sum(e, axis=1, keepdims=True)
    probs = e * pl.reciprocal(denom, approx=True)   # EUP vrcp, off the VALU
    o_ref[...] = probs.astype(o_ref.dtype)          # cast only at the store


def mlp_forward(x, params, activation="relu", tile_b_max=1024):
    """x: (B, 1, 28, 28) or anything that flattens to (-1, 784). Returns (B, 10) f32."""
    assert activation in ("relu", "tanh", "sigmoid"), "Invalid activation function"
    w1, b1, w2, b2, w3, b3 = params

    x2d = x.reshape(-1, IN_FEATURES)
    B = x2d.shape[0]
    in_itemsize = jnp.dtype(x2d.dtype).itemsize

    # Batch tile: multiple of 16 (bf16 sublane packing); ensure >= 2 grid steps
    # when the batch allows (dual-TC sharding on v7x); capped by tile_b_max.
    tile_b = min(tile_b_max, _round_up(max(B, 1), 16))
    if B >= 32:
        tile_b = min(tile_b, _round_up((B + 1) // 2, 16))
    b_pad = _round_up(B, tile_b)
    grid = (b_pad // tile_b,)

    # Pad the batch only when needed; no K padding, no wrapper-side cast of x.
    x_p = x2d if b_pad == B else jnp.pad(x2d, ((0, b_pad - B), (0, 0)))

    # Weights: bf16 for the MXU; classifier padded to 128 output lanes.
    w1_p = w1.astype(jnp.bfloat16)
    w2_p = w2.astype(jnp.bfloat16)
    w3_p = jnp.zeros((HIDDEN, OUT_PAD), jnp.bfloat16)
    w3_p = w3_p.at[:, :NUM_CLASSES].set(w3.astype(jnp.bfloat16))

    b1_p = b1.reshape(1, HIDDEN).astype(jnp.float32)
    b2_p = b2.reshape(1, HIDDEN).astype(jnp.float32)
    b3_p = jnp.full((1, OUT_PAD), NEG_BIG, jnp.float32)
    b3_p = b3_p.at[:, :NUM_CLASSES].set(b3.reshape(1, NUM_CLASSES).astype(jnp.float32))

    const = lambda i: (0, 0)   # weights/biases: same block every step (resident)

    weights_bytes = ((w1_p.size + w2_p.size + w3_p.size) * 2
                     + (b1_p.size + b2_p.size + b3_p.size) * 4)
    flops = 2 * b_pad * (IN_FEATURES * HIDDEN + HIDDEN * HIDDEN + HIDDEN * OUT_PAD)
    transcendentals = b_pad * OUT_PAD + (0 if activation == "relu" else 2 * b_pad * HIDDEN)
    bytes_accessed = (b_pad * IN_FEATURES * in_itemsize     # x streamed once
                      + weights_bytes                        # resident weights
                      + b_pad * OUT_PAD * 2)                 # bf16 output

    # Double-buffered VMEM footprint (x/out pipelined; weights counted x2
    # conservatively) with headroom; raises the scoped limit only as needed.
    footprint = 2 * (tile_b * IN_FEATURES * in_itemsize
                     + tile_b * OUT_PAD * 2
                     + weights_bytes)
    vmem_limit = int(min(max(2 * footprint, 24 * 2**20), 64 * 2**20))

    kernel = functools.partial(mlp_kernel, activation=activation)
    out = pl.pallas_call(
        kernel,
        out_shape=jax.ShapeDtypeStruct((b_pad, OUT_PAD), jnp.bfloat16),
        grid=grid,
        in_specs=[
            pl.BlockSpec((tile_b, IN_FEATURES), lambda i: (i, 0)),   # x tile (streamed)
            pl.BlockSpec((IN_FEATURES, HIDDEN), const),              # w1 (resident)
            pl.BlockSpec((1, HIDDEN), const),                        # b1
            pl.BlockSpec((HIDDEN, HIDDEN), const),                   # w2
            pl.BlockSpec((1, HIDDEN), const),                        # b2
            pl.BlockSpec((HIDDEN, OUT_PAD), const),                  # w3
            pl.BlockSpec((1, OUT_PAD), const),                       # b3
        ],
        out_specs=pl.BlockSpec((tile_b, OUT_PAD), lambda i: (i, 0)),
        compiler_params=pltpu.CompilerParams(
            dimension_semantics=("parallel",),
            vmem_limit_bytes=vmem_limit),
        cost_estimate=pl.CostEstimate(flops=flops,
                                      transcendentals=transcendentals,
                                      bytes_accessed=bytes_accessed),
    )(x_p, w1_p, b1_p, w2_p, b2_p, w3_p, b3_p)

    return out[:B, :NUM_CLASSES].astype(jnp.float32)


def init_params(key):
    """torch.nn.Linear-style init U(-1/sqrt(fan_in), 1/sqrt(fan_in)).

    Weights stored as (in_features, out_features), biases as (1, out_features).
    """
    def linear(key, fan_in, fan_out):
        kw, kb = jax.random.split(key)
        bound = 1.0 / jnp.sqrt(fan_in)
        w = jax.random.uniform(kw, (fan_in, fan_out), jnp.float32, -bound, bound)
        b = jax.random.uniform(kb, (1, fan_out), jnp.float32, -bound, bound)
        return w, b

    k1, k2, k3 = jax.random.split(key, 3)
    w1, b1 = linear(k1, IN_FEATURES, HIDDEN)
    w2, b2 = linear(k2, HIDDEN, HIDDEN)
    w3, b3 = linear(k3, HIDDEN, NUM_CLASSES)
    return (w1, b1, w2, b2, w3, b3)


def mlp_reference_f32(x, params, activation="relu"):
    """Pure-JAX f32 reference (matches the PyTorch module semantics)."""
    w1, b1, w2, b2, w3, b3 = params
    h = x.reshape(-1, IN_FEATURES).astype(jnp.float32)
    h = _activation(h @ w1 + b1, activation)
    h = _activation(h @ w2 + b2, activation)
    logits = h @ w3 + b3
    return jax.nn.softmax(logits, axis=1)


if __name__ == "__main__":
    key = jax.random.PRNGKey(0)
    k_params, k_x = jax.random.split(key)

    params = init_params(k_params)
    # MNIST-like NCHW input: batch=2, 1 channel, 28x28 spatial.
    x = jax.random.normal(k_x, (2, 1, 28, 28), dtype=jnp.float32)

    out = mlp_forward(x, params, activation="relu")
    out = jax.block_until_ready(out)

    ref = mlp_reference_f32(x, params, activation="relu")
    assert out.shape == (2, NUM_CLASSES)
    # bf16 matmul operands + bf16 output store -> loose tolerance vs f32 ref.
    assert jnp.allclose(out, ref, atol=2e-2, rtol=2e-2), "mismatch vs f32 reference"
    # bf16 output + approx reciprocal: row sums ~1 within ~1e-2.
    assert jnp.allclose(jnp.sum(out, axis=1), 1.0, atol=1e-2), "softmax rows must sum to ~1"

    print("KERNEL_OK")
</pallas_src>

<mosaic_0001>
module attributes {stable_mosaic.version = 11 : i64} {
  func.func @mlp_kernel(%arg0: i32, %arg1: memref<16x784xf32, #tpu.memory_space<vmem>>, %arg2: memref<784x256xbf16, #tpu.memory_space<vmem>>, %arg3: memref<1x256xf32, #tpu.memory_space<vmem>>, %arg4: memref<256x256xbf16, #tpu.memory_space<vmem>>, %arg5: memref<1x256xf32, #tpu.memory_space<vmem>>, %arg6: memref<256x128xbf16, #tpu.memory_space<vmem>>, %arg7: memref<1x128xf32, #tpu.memory_space<vmem>>, %arg8: memref<16x128xbf16, #tpu.memory_space<vmem>>) attributes {dimension_semantics = [#tpu.dimension_semantics<parallel>], iteration_bounds = array<i64: 1>, scalar_prefetch = 0 : i64, scratch_operands = 0 : i64, tpu.core_type = #tpu.core_type<tc>, window_params = [{transform_indices = @transform_0, window_bounds = array<i64: 16, 784>}, {pipeline_mode = #tpu.pipeline_mode<synchronous>, transform_indices = @transform_1, window_bounds = array<i64: 784, 256>}, {pipeline_mode = #tpu.pipeline_mode<synchronous>, transform_indices = @transform_2, window_bounds = array<i64: 1, 256>}, {pipeline_mode = #tpu.pipeline_mode<synchronous>, transform_indices = @transform_3, window_bounds = array<i64: 256, 256>}, {pipeline_mode = #tpu.pipeline_mode<synchronous>, transform_indices = @transform_4, window_bounds = array<i64: 1, 256>}, {pipeline_mode = #tpu.pipeline_mode<synchronous>, transform_indices = @transform_5, window_bounds = array<i64: 256, 128>}, {pipeline_mode = #tpu.pipeline_mode<synchronous>, transform_indices = @transform_6, window_bounds = array<i64: 1, 128>}, {transform_indices = @transform_7, window_bounds = array<i64: 16, 128>}]} {
    %c0 = arith.constant 0 : index
    %c0_0 = arith.constant 0 : index
    %0 = vector.load %arg1[%c0, %c0_0] : memref<16x784xf32, #tpu.memory_space<vmem>>, vector<16x784xf32>
    %1 = arith.truncf %0 : vector<16x784xf32> to vector<16x784xbf16>
    %c0_1 = arith.constant 0 : index
    %c0_2 = arith.constant 0 : index
    %2 = vector.load %arg2[%c0_1, %c0_2] : memref<784x256xbf16, #tpu.memory_space<vmem>>, vector<784x256xbf16>
    %cst = arith.constant dense<0.000000e+00> : vector<16x256xf32>
    %3 = tpu.matmul %1, %2, %cst {dimension_numbers = #tpu.dot_dimension_numbers<[1], [0], [0], [1], [0, 0, 1, 1], [], []>} : vector<16x784xbf16>, vector<784x256xbf16>, vector<16x256xf32> -> vector<16x256xf32>
    %c0_3 = arith.constant 0 : index
    %c0_4 = arith.constant 0 : index
    %4 = vector.load %arg3[%c0_3, %c0_4] : memref<1x256xf32, #tpu.memory_space<vmem>>, vector<1x256xf32>
    %5 = vector.broadcast %4 : vector<1x256xf32> to vector<16x256xf32>
    %6 = arith.addf %3, %5 : vector<16x256xf32>
    %cst_5 = arith.constant 0.000000e+00 : f32
    %7 = vector.broadcast %cst_5 : f32 to vector<16x256xf32>
    %8 = arith.maximumf %6, %7 : vector<16x256xf32>
    %9 = arith.truncf %8 : vector<16x256xf32> to vector<16x256xbf16>
    %c0_6 = arith.constant 0 : index
    %c0_7 = arith.constant 0 : index
    %10 = vector.load %arg4[%c0_6, %c0_7] : memref<256x256xbf16, #tpu.memory_space<vmem>>, vector<256x256xbf16>
    %cst_8 = arith.constant dense<0.000000e+00> : vector<16x256xf32>
    %11 = tpu.matmul %9, %10, %cst_8 {dimension_numbers = #tpu.dot_dimension_numbers<[1], [0], [0], [1], [0, 0, 1, 1], [], []>} : vector<16x256xbf16>, vector<256x256xbf16>, vector<16x256xf32> -> vector<16x256xf32>
    %c0_9 = arith.constant 0 : index
    %c0_10 = arith.constant 0 : index
    %12 = vector.load %arg5[%c0_9, %c0_10] : memref<1x256xf32, #tpu.memory_space<vmem>>, vector<1x256xf32>
    %13 = vector.broadcast %12 : vector<1x256xf32> to vector<16x256xf32>
    %14 = arith.addf %11, %13 : vector<16x256xf32>
    %cst_11 = arith.constant 0.000000e+00 : f32
    %15 = vector.broadcast %cst_11 : f32 to vector<16x256xf32>
    %16 = arith.maximumf %14, %15 : vector<16x256xf32>
    %17 = arith.truncf %16 : vector<16x256xf32> to vector<16x256xbf16>
    %c0_12 = arith.constant 0 : index
    %c0_13 = arith.constant 0 : index
    %18 = vector.load %arg6[%c0_12, %c0_13] : memref<256x128xbf16, #tpu.memory_space<vmem>>, vector<256x128xbf16>
    %cst_14 = arith.constant dense<0.000000e+00> : vector<16x128xf32>
    %19 = tpu.matmul %17, %18, %cst_14 {dimension_numbers = #tpu.dot_dimension_numbers<[1], [0], [0], [1], [0, 0, 1, 1], [], []>} : vector<16x256xbf16>, vector<256x128xbf16>, vector<16x128xf32> -> vector<16x128xf32>
    %c0_15 = arith.constant 0 : index
    %c0_16 = arith.constant 0 : index
    %20 = vector.load %arg7[%c0_15, %c0_16] : memref<1x128xf32, #tpu.memory_space<vmem>>, vector<1x128xf32>
    %21 = vector.broadcast %20 : vector<1x128xf32> to vector<16x128xf32>
    %22 = arith.addf %19, %21 : vector<16x128xf32>
    %cst_17 = arith.constant dense<0xFF800000> : vector<16xf32>
    %23 = vector.multi_reduction <maximumf>, %22, %cst_17 [1] : vector<16x128xf32> to vector<16xf32>
    %24 = vector.shape_cast %23 : vector<16xf32> to vector<16x1xf32>
    %25 = vector.broadcast %24 : vector<16x1xf32> to vector<16x128xf32>
    %26 = arith.subf %22, %25 : vector<16x128xf32>
    %27 = math.exp %26 : vector<16x128xf32>
    %cst_18 = arith.constant dense<0.000000e+00> : vector<16xf32>
    %28 = vector.multi_reduction <add>, %27, %cst_18 [1] : vector<16x128xf32> to vector<16xf32>
    %29 = vector.shape_cast %28 : vector<16xf32> to vector<16x1xf32>
    %30 = tpu.reciprocal %29 {approx = true} : vector<16x1xf32> -> vector<16x1xf32>
    %31 = vector.broadcast %30 : vector<16x1xf32> to vector<16x128xf32>
    %32 = arith.mulf %27, %31 : vector<16x128xf32>
    %33 = arith.truncf %32 : vector<16x128xf32> to vector<16x128xbf16>
    %c0_19 = arith.constant 0 : index
    %c0_20 = arith.constant 0 : index
    %34 = vector.load %arg8[%c0_19, %c0_20] : memref<16x128xbf16, #tpu.memory_space<vmem>>, vector<16x128xbf16>
    tpu.vector_store %arg8[%c0_19, %c0_20], %33 {strides = array<i32>} : memref<16x128xbf16, #tpu.memory_space<vmem>>, vector<16x128xbf16>,
    return
  }
  func.func @transform_0(%arg0: i32) -> (i32, i32) {
    %c0_i32 = arith.constant 0 : i32
    %c0_i32_0 = arith.constant 0 : i32
    return %arg0, %c0_i32 : i32, i32
  }
  func.func @transform_1(%arg0: i32) -> (i32, i32) {
    %c0_i32 = arith.constant 0 : i32
    %c0_i32_0 = arith.constant 0 : i32
    %c0_i32_1 = arith.constant 0 : i32
    return %c0_i32, %c0_i32_0 : i32, i32
  }
  func.func @transform_2(%arg0: i32) -> (i32, i32) {
    %c0_i32 = arith.constant 0 : i32
    %c0_i32_0 = arith.constant 0 : i32
    %c0_i32_1 = arith.constant 0 : i32
    return %c0_i32, %c0_i32_0 : i32, i32
  }
  func.func @transform_3(%arg0: i32) -> (i32, i32) {
    %c0_i32 = arith.constant 0 : i32
    %c0_i32_0 = arith.constant 0 : i32
    %c0_i32_1 = arith.constant 0 : i32
    return %c0_i32, %c0_i32_0 : i32, i32
  }
  func.func @transform_4(%arg0: i32) -> (i32, i32) {
    %c0_i32 = arith.constant 0 : i32
    %c0_i32_0 = arith.constant 0 : i32
    %c0_i32_1 = arith.constant 0 : i32
    return %c0_i32, %c0_i32_0 : i32, i32
  }
  func.func @transform_5(%arg0: i32) -> (i32, i32) {
    %c0_i32 = arith.constant 0 : i32
    %c0_i32_0 = arith.constant 0 : i32
    %c0_i32_1 = arith.constant 0 : i32
    return %c0_i32, %c0_i32_0 : i32, i32
  }
  func.func @transform_6(%arg0: i32) -> (i32, i32) {
    %c0_i32 = arith.constant 0 : i32
    %c0_i32_0 = arith.constant 0 : i32
    %c0_i32_1 = arith.constant 0 : i32
    return %c0_i32, %c0_i32_0 : i32, i32
  }
  func.func @transform_7(%arg0: i32) -> (i32, i32) {
    %c0_i32 = arith.constant 0 : i32
    %c0_i32_0 = arith.constant 0 : i32
    return %arg0, %c0_i32 : i32, i32
  }
}

</mosaic_0001>

<bundles_post_ra>
// kernel: tpu_custom_call.1
= control target key start
LH: loop header
LB: loop body
LE: loop exit
PB: predicated region body
PF: predicated region fallthrough
CT: control target
= control target key end

     0   :  { %12 = vsyncpa [#allocation3], 0  ;;  %s2414_s0 = inlined_call_operand.hbm [shape: f32[16,784], index: 0, kind: input, shape index: {}]   ;;  %s2415_s1 = inlined_call_operand.hbm [shape: bf16[784,256], index: 1, kind: input, shape index: {}]   ;;  %s2416_s2 = inlined_call_operand.hbm [shape: f32[1,256], index: 2, kind: input, shape index: {}]   ;;  %s2417_s3 = inlined_call_operand.hbm [shape: bf16[256,256], index: 3, kind: input, shape index: {}]   ;;  %s2418_s4 = inlined_call_operand.vmem [shape: f32[1,256], index: 4, kind: input, shape index: {}]   ;;  %s2419_s5 = inlined_call_operand.hbm [shape: bf16[256,128], index: 5, kind: input, shape index: {}]   ;;  %s2420_s6 = inlined_call_operand.vmem [shape: f32[1,128], index: 6, kind: input, shape index: {}]   ;;  %s2421_s7 = inlined_call_operand.hbm [shape: bf16[16,128], index: 7, kind: output, shape index: {}]  }
   0x1   :  { %13 = vsyncpa [#allocation6], 0 }
   0x2   :  { %14 = vsyncpa [#allocation9], 0  ;;  %s33_s26 = sshll.u32 %s2415_s1, 4  ;;  %s34_s26 = int_to_ptr.hbm [resolvable:$true] %s33_s26 }
   0x3   :  { %15 = vsyncpa [#allocation4], 0  ;;  %s2298_s27 = smov [#allocation5]   ;;  %s57_s8 = sshll.u32 %s2417_s3, 4  ;;  %s58_s8 = int_to_ptr.hbm [resolvable:$true] %s57_s8 }
   0x4   :  { %s35_s28 = sshll.u32 %s2298_s27, 4  ;;  %s2299_s9 = smov 128   ;;  %s36_s28 = int_to_ptr.vmem [resolvable:$true] %s35_s28 }
   0x5   :  { %s2300_s10 = smov 8   ;;  %s2301_s11 = smov [#allocation8]  }
   0x6   :  { %41 = dma.hbm_to_vmem [thread:$0]  %s34_s26, 12544, %s36_s28, [#allocation6], %s2299_s9, %s2299_s9, %s2300_s10  }
   0x7   :  { %s59_s12 = sshll.u32 %s2301_s11, 4  ;;  %s20_s15 = sshll.u32 %s2414_s0, 4  ;;  %s60_s12 = int_to_ptr.vmem [resolvable:$true] %s59_s12  ;;  %s21_s15 = int_to_ptr.hbm [resolvable:$true] %s20_s15 }
   0x8   :  { %65 = dma.hbm_to_vmem [thread:$0]  %s58_s8, 4096, %s60_s12, [#allocation9], %s2299_s9, %s2299_s9, %s2300_s10  }
   0x9   :  { %s2302_s1 = smov [#allocation2]   ;;  %s47_s3 = sshll.u32 %s2416_s2, 4  ;;  %s48_s3 = int_to_ptr.hbm [resolvable:$true] %s47_s3 }
   0xa   :  { %s22_s16 = sshll.u32 %s2302_s1, 4  ;;  %s2303_s19 = smov 896   ;;  %s23_s16 = int_to_ptr.vmem [resolvable:$true] %s22_s16 }
   0xb   :  { %s2304_s20 = smov 56   ;;  %s2305_s21 = smov [#allocation7]  }
   0xc   :  { %28 = dma.hbm_to_vmem [thread:$0]  %s21_s15, 1792, %s23_s16, [#allocation3], %s2303_s19, %s2303_s19, %s2304_s20  }
   0xd   :  { %s49_s22 = sshll.u32 %s2305_s21, 4  ;;  %s72_s0 = sshll.u32 %s2419_s5, 4  ;;  %s50_s22 = int_to_ptr.vmem [resolvable:$true] %s49_s22  ;;  %s73_s0 = int_to_ptr.hbm [resolvable:$true] %s72_s0 }
   0xe   :  { %52 = dma.hbm_to_vmem [thread:$0]  %s48_s3, 32, %s50_s22, [#allocation6]  }
   0xf   :  { %s2306_s25 = smov [#allocation10]   ;;  %s2307_s27 = smov 64  }
  0x10   :  { %s74_s26 = sshll.u32 %s2306_s25, 4  ;;  %s2308_s28 = smov 4   ;;  %s75_s26 = int_to_ptr.vmem [resolvable:$true] %s74_s26 }
  0x11   :  { %80 = dma.hbm_to_vmem [thread:$0]  %s73_s0, 2048, %s75_s26, [#allocation9], %s2307_s27, %s2307_s27, %s2308_s28  }
  0x12   :  { %2290 = dma.done.wait [#allocation3], 1792  }
  0x13   :  { %2291 = vsyncadd [#allocation3], 4294965504 }
  0x14   :  { %2292 = dma.done.wait [#allocation6], 12576  }
  0x15   :  { %2293 = vsyncadd [#allocation6], 4294954720 }
  0x16   :  { %2294 = dma.done.wait [#allocation9], 6144  }
  0x17   :  { %2295 = vsyncadd [#allocation9], 4294961152  ;;  %v1446_v0 = vld [vmem:[#allocation5 + $0x70] sm:$0xf]  ;;  %v1989_v1 = vld [vmem:[#allocation5 + $0x74] sm:$0xf0] }
  0x18   :  { %v1574_v2 = vld [vmem:[#allocation5 + $0x170] sm:$0xf]  ;;  %v1447_v3 = vor.u32 %v1989_v1, %v1446_v0  ;;  %v2021_v4 = vld [vmem:[#allocation5 + $0x174] sm:$0xf0]  ;;  %v1438_v11 = vld [vmem:[#allocation5 + $0x60] sm:$0xf] }
  0x19   :  { %v1638_v5 = vld [vmem:[#allocation5 + $0x1f0] sm:$0xf]  ;;  %v2037_v6 = vld [vmem:[#allocation5 + $0x1f4] sm:$0xf0]  ;;  %v1575_v7 = vor.u32 %v2021_v4, %v1574_v2  ;;  %v1987_v13 = vld [vmem:[#allocation5 + $0x64] sm:$0xf0] }
  0x1a   :  { %v1639_v8 = vor.u32 %v2037_v6, %v1638_v5  ;;  %v1510_v9 = vld [vmem:[#allocation5 + $0xf0] sm:$0xf]  ;;  %v2005_v10 = vld [vmem:[#allocation5 + $0xf4] sm:$0xf0]  ;;  %723 = vmatpush.bf16.msra.mxu0 %v1447_v3  ;;  %v1566_v14 = vld [vmem:[#allocation5 + $0x160] sm:$0xf]  ;;  %v1439_v16 = vor.u32 %v1987_v13, %v1438_v11 }
  0x1b   :  { %v1511_v12 = vor.u32 %v2005_v10, %v1510_v9  ;;  %v2019_v15 = vld [vmem:[#allocation5 + $0x164] sm:$0xf0]  ;;  %751 = vmatpush.bf16.msra.mxu2 %v1575_v7  ;;  %v1630_v18 = vld [vmem:[#allocation5 + $0x1e0] sm:$0xf]  ;;  %v1430_v23 = vld [vmem:[#allocation5 + $0x50] sm:$0xf] }
  0x1c   :  { %765 = vmatpush.bf16.msra.mxu3 %v1639_v8  ;;  %v1567_v17 = vor.u32 %v2019_v15, %v1566_v14  ;;  %v2035_v19 = vld [vmem:[#allocation5 + $0x1e4] sm:$0xf0]  ;;  %v1502_v20 = vld [vmem:[#allocation5 + $0xe0] sm:$0xf]  ;;  %v1985_v24 = vld [vmem:[#allocation5 + $0x54] sm:$0xf0] }
  0x1d   :  { %737 = vmatpush.bf16.msra.mxu1 %v1511_v12  ;;  %v1631_v21 = vor.u32 %v2035_v19, %v1630_v18  ;;  %v2003_v22 = vld [vmem:[#allocation5 + $0xe4] sm:$0xf0]  ;;  %v1558_v26 = vld [vmem:[#allocation5 + $0x150] sm:$0xf]  ;;  %v2017_v27 = vld [vmem:[#allocation5 + $0x154] sm:$0xf0]  ;;  %v1431_v29 = vor.u32 %v1985_v24, %v1430_v23 }
  0x1e   :  { %v1503_v25 = vor.u32 %v2003_v22, %v1502_v20  ;;  %v1622_v28 = vld [vmem:[#allocation5 + $0x1d0] sm:$0xf]  ;;  %724 = vmatpush.bf16.msra.mxu0 %v1439_v16  ;;  %v2033_v30 = vld [vmem:[#allocation5 + $0x1d4] sm:$0xf0]  ;;  %v1559_v33 = vor.u32 %v2017_v27, %v1558_v26  ;;  %v1422_v35 = vld [vmem:[#allocation5 + $0x40] sm:$0xf] }
  0x1f   :  { %v1494_v31 = vld [vmem:[#allocation5 + $0xd0] sm:$0xf]  ;;  %v2001_v32 = vld [vmem:[#allocation5 + $0xd4] sm:$0xf0]  ;;  %752 = vmatpush.bf16.msra.mxu2 %v1567_v17  ;;  %v1623_v34 = vor.u32 %v2033_v30, %v1622_v28  ;;  %v1983_v36 = vld [vmem:[#allocation5 + $0x44] sm:$0xf0] }
  0x20   :  { %766 = vmatpush.bf16.msra.mxu3 %v1631_v21  ;;  %v1550_v37 = vld [vmem:[#allocation5 + $0x140] sm:$0xf]  ;;  %v1495_v38 = vor.u32 %v2001_v32, %v1494_v31  ;;  %v2015_v39 = vld [vmem:[#allocation5 + $0x144] sm:$0xf0]  ;;  %v1423_v44 = vor.u32 %v1983_v36, %v1422_v35  ;;  %v1414_v47 = vld [vmem:[#allocation5 + $0x30] sm:$0xf] }
  0x21   :  { %738 = vmatpush.bf16.msra.mxu1 %v1503_v25  ;;  %v1614_v40 = vld [vmem:[#allocation5 + $0x1c0] sm:$0xf]  ;;  %v2031_v41 = vld [vmem:[#allocation5 + $0x1c4] sm:$0xf0]  ;;  %v1551_v45 = vor.u32 %v2015_v39, %v1550_v37  ;;  %v1981_v48 = vld [vmem:[#allocation5 + $0x34] sm:$0xf0] }
  0x22   :  { %v1486_v42 = vld [vmem:[#allocation5 + $0xc0] sm:$0xf]  ;;  %v1999_v43 = vld [vmem:[#allocation5 + $0xc4] sm:$0xf0]  ;;  %725 = vmatpush.bf16.msra.mxu0 %v1431_v29  ;;  %v1615_v46 = vor.u32 %v2031_v41, %v1614_v40  ;;  %v1542_v49 = vld [vmem:[#allocation5 + $0x130] sm:$0xf]  ;;  %v1415_v56 = vor.u32 %v1981_v48, %v1414_v47 }
  0x23   :  { %753 = vmatpush.bf16.msra.mxu2 %v1559_v33  ;;  %v1487_v50 = vor.u32 %v1999_v43, %v1486_v42  ;;  %v2013_v51 = vld [vmem:[#allocation5 + $0x134] sm:$0xf0]  ;;  %v1606_v52 = vld [vmem:[#allocation5 + $0x1b0] sm:$0xf]  ;;  %v1406_v59 = vld [vmem:[#allocation5 + $0x20] sm:$0xf] }
  0x24   :  { %767 = vmatpush.bf16.msra.mxu3 %v1623_v34  ;;  %v2029_v53 = vld [vmem:[#allocation5 + $0x1b4] sm:$0xf0]  ;;  %v1478_v54 = vld [vmem:[#allocation5 + $0xb0] sm:$0xf]  ;;  %v1543_v57 = vor.u32 %v2013_v51, %v1542_v49  ;;  %v1979_v60 = vld [vmem:[#allocation5 + $0x24] sm:$0xf0] }
  0x25   :  { %739 = vmatpush.bf16.msra.mxu1 %v1495_v38  ;;  %v1997_v55 = vld [vmem:[#allocation5 + $0xb4] sm:$0xf0]  ;;  %v1607_v58 = vor.u32 %v2029_v53, %v1606_v52  ;;  %v1534_v61 = vld [vmem:[#allocation5 + $0x120] sm:$0xf]  ;;  %v2011_v63 = vld [vmem:[#allocation5 + $0x124] sm:$0xf0]  ;;  %v1407_v4 = vor.u32 %v1979_v60, %v1406_v59 }
  0x26   :  { %726 = vmatpush.bf16.msra.mxu0 %v1423_v44  ;;  %v1479_v62 = vor.u32 %v1997_v55, %v1478_v54  ;;  %v1598_v0 = vld [vmem:[#allocation5 + $0x1a0] sm:$0xf]  ;;  %v2027_v1 = vld [vmem:[#allocation5 + $0x1a4] sm:$0xf0]  ;;  %v1398_v5 = vld [vmem:[#allocation5 + $0x10] sm:$0xf]  ;;  %v1535_v6 = vor.u32 %v2011_v63, %v1534_v61 }
  0x27   :  { %754 = vmatpush.bf16.msra.mxu2 %v1551_v45  ;;  %v1470_v2 = vld [vmem:[#allocation5 + $0xa0] sm:$0xf]  ;;  %v1995_v3 = vld [vmem:[#allocation5 + $0xa4] sm:$0xf0]  ;;  %v1599_v7 = vor.u32 %v2027_v1, %v1598_v0  ;;  %v1977_v8 = vld [vmem:[#allocation5 + $0x14] sm:$0xf0] }
  0x28   :  { %768 = vmatpush.bf16.msra.mxu3 %v1615_v46  ;;  %v1526_v9 = vld [vmem:[#allocation5 + $0x110] sm:$0xf]  ;;  %v2009_v10 = vld [vmem:[#allocation5 + $0x114] sm:$0xf0]  ;;  %v1471_v11 = vor.u32 %v1995_v3, %v1470_v2  ;;  %v1390_v16 = vld [vmem:[#allocation5] sm:$0xf]  ;;  %v1399_v18 = vor.u32 %v1977_v8, %v1398_v5 }
  0x29   :  { %740 = vmatpush.bf16.msra.mxu1 %v1487_v50  ;;  %v1590_v12 = vld [vmem:[#allocation5 + $0x190] sm:$0xf]  ;;  %v2025_v13 = vld [vmem:[#allocation5 + $0x194] sm:$0xf0]  ;;  %v1975_v17 = vld [vmem:[#allocation5 + $0x4] sm:$0xf0]  ;;  %v1527_v23 = vor.u32 %v2009_v10, %v1526_v9 }
  0x2a   :  { %727 = vmatpush.bf16.msra.mxu0 %v1415_v56  ;;  %v1462_v14 = vld [vmem:[#allocation5 + $0x90] sm:$0xf]  ;;  %v1993_v15 = vld [vmem:[#allocation5 + $0x94] sm:$0xf0]  ;;  %v1518_v19 = vld [vmem:[#allocation5 + $0x100] sm:$0xf]  ;;  %v1591_v24 = vor.u32 %v2025_v13, %v1590_v12  ;;  %v1391_v35 = vor.u32 %v1975_v17, %v1390_v16 }
  0x2b   :  { %755 = vmatpush.bf16.msra.mxu2 %v1543_v57  ;;  %v2007_v20 = vld [vmem:[#allocation5 + $0x104] sm:$0xf0]  ;;  %v1582_v21 = vld [vmem:[#allocation5 + $0x180] sm:$0xf]  ;;  %v1702_v25 = vld [vmem:[#allocation5 + $0x270] sm:$0xf]  ;;  %v1463_v28 = vor.u32 %v1993_v15, %v1462_v14 }
  0x2c   :  { %769 = vmatpush.bf16.msra.mxu3 %v1607_v58  ;;  %v2023_v22 = vld [vmem:[#allocation5 + $0x184] sm:$0xf0]  ;;  %v2053_v26 = vld [vmem:[#allocation5 + $0x274] sm:$0xf0]  ;;  %v1988_v27 = vld [vmem:[#allocation5 + $0x74] sm:$0xf]  ;;  %v1519_v39 = vor.u32 %v2007_v20, %v1518_v19 }
  0x2d   :  { %741 = vmatpush.bf16.msra.mxu1 %v1479_v62  ;;  %v1448_v29 = vld [vmem:[#allocation5 + $0x78] sm:$0xf0]  ;;  %v1454_v30 = vld [vmem:[#allocation5 + $0x80] sm:$0xf]  ;;  %v1991_v31 = vld [vmem:[#allocation5 + $0x84] sm:$0xf0]  ;;  %v1583_v40 = vor.u32 %v2023_v22, %v1582_v21  ;;  %v1703_v44 = vor.u32 %v2053_v26, %v1702_v25 }
  0x2e   :  { %728 = vmatpush.bf16.msra.mxu0 %v1407_v4  ;;  %v106_v32 = vld [vmem:[#allocation2 + $0x10] sm:$0xff]  ;;  %v113_v33 = vld [vmem:[#allocation2 + $0x48] sm:$0xff]  ;;  %v1766_v34 = vld [vmem:[#allocation5 + $0x2f0] sm:$0xf]  ;;  %v1451_v45 = vor.u32 %v1988_v27, %v1448_v29  ;;  %v1455_v49 = vor.u32 %v1991_v31, %v1454_v30  ;;  %vm719_vm0 = vcmask 130048   ;;  %s1373_s10 = sshll.u32 %s2421_s7, 4  ;;  %s1374_s10 = int_to_ptr.hbm [resolvable:$true] %s1373_s10 }
  0x2f   :  { %756 = vmatpush.bf16.msra.mxu2 %v1535_v6  ;;  %v2069_v36 = vld [vmem:[#allocation5 + $0x2f4] sm:$0xf0]  ;;  %v1774_v37 = vld [vmem:[#allocation5 + $0x300] sm:$0xf]  ;;  %v2071_v38 = vld [vmem:[#allocation5 + $0x304] sm:$0xf0]  ;;  %v2368_v54 = vpack.c.bf16 %v113_v33, %v106_v32 }
  0x30   :  { %770 = vmatpush.bf16.msra.mxu3 %v1599_v7  ;;  %v2004_v41 = vld [vmem:[#allocation5 + $0xf4] sm:$0xf]  ;;  %v1512_v42 = vld [vmem:[#allocation5 + $0xf8] sm:$0xf0]  ;;  %v111_v46 = vld [vmem:[#allocation2 + $0x38] sm:$0xff]  ;;  %v1775_v50 = vor.u32 %v2071_v38, %v1774_v37  ;;  %v1767_v55 = vor.u32 %v2069_v36, %v1766_v34 }
  0x31   :  { %742 = vmatpush.bf16.msra.mxu1 %v1471_v11  ;;  %v104_v43 = vld [vmem:[#allocation2] sm:$0xff]  ;;  %v107_v47 = vld [vmem:[#allocation2 + $0x18] sm:$0xff]  ;;  %v114_v48 = vld [vmem:[#allocation2 + $0x50] sm:$0xff]  ;;  %v1515_v59 = vor.u32 %v2004_v41, %v1512_v42 }
  0x32   :  { %729 = vmatpush.bf16.msra.mxu0 %v1399_v18  ;;  %v1694_v51 = vld [vmem:[#allocation5 + $0x260] sm:$0xf]  ;;  %v2051_v52 = vld [vmem:[#allocation5 + $0x264] sm:$0xf0]  ;;  %v1986_v53 = vld [vmem:[#allocation5 + $0x64] sm:$0xf]  ;;  %v2370_v60 = vpack.c.bf16 %v111_v46, %v104_v43  ;;  %v2372_v63 = vpack.c.bf16 %v114_v48, %v107_v47 }
  0x33   :  { %757 = vmatpush.bf16.msra.mxu2 %v1527_v23  ;;  %v1440_v56 = vld [vmem:[#allocation5 + $0x68] sm:$0xf0]  ;;  %v105_v57 = vld [vmem:[#allocation2 + $0x8] sm:$0xff]  ;;  %v112_v58 = vld [vmem:[#allocation2 + $0x40] sm:$0xff]  ;;  %v1695_v0 = vor.u32 %v2051_v52, %v1694_v51 }
  0x34   :  { %771 = vmatpush.bf16.msra.mxu3 %v1591_v24  ;;  %v1758_v61 = vld [vmem:[#allocation5 + $0x2e0] sm:$0xf]  ;;  %v2067_v62 = vld [vmem:[#allocation5 + $0x2e4] sm:$0xf0]  ;;  %v2002_v1 = vld [vmem:[#allocation5 + $0xe4] sm:$0xf]  ;;  %v1443_v3 = vor.u32 %v1986_v53, %v1440_v56  ;;  %v2374_v4 = vpack.c.bf16 %v112_v58, %v105_v57 }
  0x35   :  { %743 = vmatpush.bf16.msra.mxu1 %v1463_v28  ;;  %v1504_v2 = vld [vmem:[#allocation5 + $0xe8] sm:$0xf0]  ;;  %v1686_v5 = vld [vmem:[#allocation5 + $0x250] sm:$0xf]  ;;  %v2049_v6 = vld [vmem:[#allocation5 + $0x254] sm:$0xf0]  ;;  %v1759_v7 = vor.u32 %v2067_v62, %v1758_v61 }
  0x36   :  { %730 = vmatpush.bf16.msra.mxu0 %v1391_v35  ;;  %v1984_v8 = vld [vmem:[#allocation5 + $0x54] sm:$0xf]  ;;  %v1432_v9 = vld [vmem:[#allocation5 + $0x58] sm:$0xf0]  ;;  %v1507_v10 = vor.u32 %v2002_v1, %v1504_v2  ;;  %v1750_v11 = vld [vmem:[#allocation5 + $0x2d0] sm:$0xf]  ;;  %v1687_v13 = vor.u32 %v2049_v6, %v1686_v5 }
  0x37   :  { %758 = vmatpush.bf16.msra.mxu2 %v1519_v39  ;;  %v2065_v12 = vld [vmem:[#allocation5 + $0x2d4] sm:$0xf0]  ;;  %v2000_v14 = vld [vmem:[#allocation5 + $0xd4] sm:$0xf]  ;;  %v1496_v15 = vld [vmem:[#allocation5 + $0xd8] sm:$0xf0]  ;;  %v1435_v16 = vor.u32 %v1984_v8, %v1432_v9 }
  0x38   :  { %772 = vmatpush.bf16.msra.mxu3 %v1583_v40  ;;  %v1678_v17 = vld [vmem:[#allocation5 + $0x240] sm:$0xf]  ;;  %v2047_v18 = vld [vmem:[#allocation5 + $0x244] sm:$0xf0]  ;;  %v1751_v19 = vor.u32 %v2065_v12, %v1750_v11  ;;  %v1982_v20 = vld [vmem:[#allocation5 + $0x44] sm:$0xf]  ;;  %v1499_v22 = vor.u32 %v2000_v14, %v1496_v15 }
  0x39   :  { %744 = vmatpush.bf16.msra.mxu1 %v1455_v49  ;;  %731 = vmatmul.bf16.vlgmr.msra.gmra.mxu0 %v2370_v60  ;;  %v1424_v21 = vld [vmem:[#allocation5 + $0x48] sm:$0xf0]  ;;  %v1742_v23 = vld [vmem:[#allocation5 + $0x2c0] sm:$0xf]  ;;  %v2063_v24 = vld [vmem:[#allocation5 + $0x2c4] sm:$0xf0]  ;;  %v1679_v25 = vor.u32 %v2047_v18, %v1678_v17 }
  0x3a   :  { %779 = vmatpush.bf16.msrb.mxu0 %v1703_v44  ;;  %759 = vmatmul.bf16.vlgmr.msra.gmra.mxu2 %v2368_v54  ;;  %v1998_v26 = vld [vmem:[#allocation5 + $0xc4] sm:$0xf]  ;;  %v1488_v27 = vld [vmem:[#allocation5 + $0xc8] sm:$0xf0]  ;;  %v1427_v28 = vor.u32 %v1982_v20, %v1424_v21  ;;  %v1670_v29 = vld [vmem:[#allocation5 + $0x230] sm:$0xf]  ;;  %v1743_v31 = vor.u32 %v2063_v24, %v1742_v23 }
  0x3b   :  { %814 = vmatpush.bf16.msrb.mxu2 %v1775_v50  ;;  %773 = vmatmul.bf16.vlgmr.msra.gmra.mxu3 %v2372_v63  ;;  %v2045_v30 = vld [vmem:[#allocation5 + $0x234] sm:$0xf0]  ;;  %v1980_v32 = vld [vmem:[#allocation5 + $0x34] sm:$0xf]  ;;  %v1416_v33 = vld [vmem:[#allocation5 + $0x38] sm:$0xf0]  ;;  %v1491_v35 = vor.u32 %v1998_v26, %v1488_v27 }
  0x3c   :  { %821 = vmatpush.bf16.msrb.mxu3 %v1451_v45  ;;  %745 = vmatmul.bf16.vlgmr.msra.gmra.mxu1 %v2374_v4  ;;  %v1734_v34 = vld [vmem:[#allocation5 + $0x2b0] sm:$0xf]  ;;  %v2061_v36 = vld [vmem:[#allocation5 + $0x2b4] sm:$0xf0]  ;;  %v110_v37 = vld [vmem:[#allocation2 + $0x30] sm:$0xff]  ;;  %v1671_v39 = vor.u32 %v2045_v30, %v1670_v29  ;;  %v1419_v42 = vor.u32 %v1980_v32, %v1416_v33 }
  0x3d   :  { %793 = vmatpush.bf16.msrb.mxu1 %v1767_v55  ;;  %v117_v38 = vld [vmem:[#allocation2 + $0x68] sm:$0xff]  ;;  %v1996_v40 = vld [vmem:[#allocation5 + $0xb4] sm:$0xf]  ;;  %v1662_v43 = vld [vmem:[#allocation5 + $0x220] sm:$0xf]  ;;  %v1735_v45 = vor.u32 %v2061_v36, %v1734_v34 }
  0x3e   :  { %780 = vmatpush.bf16.msrb.mxu0 %v1695_v0  ;;  %v1480_v41 = vld [vmem:[#allocation5 + $0xb8] sm:$0xf0]  ;;  %v2043_v44 = vld [vmem:[#allocation5 + $0x224] sm:$0xf0]  ;;  %v1978_v46 = vld [vmem:[#allocation5 + $0x24] sm:$0xf]  ;;  %v2380_v48 = vpack.c.bf16 %v117_v38, %v110_v37 }
  0x3f   :  { %835 = vmatpush.bf16.msra.mxu2 %v1515_v59  ;;  %v1408_v47 = vld [vmem:[#allocation5 + $0x28] sm:$0xf0]  ;;  %v1483_v49 = vor.u32 %v1996_v40, %v1480_v41  ;;  %v1726_v50 = vld [vmem:[#allocation5 + $0x2a0] sm:$0xf]  ;;  %v2059_v51 = vld [vmem:[#allocation5 + $0x2a4] sm:$0xf0]  ;;  %v1663_v52 = vor.u32 %v2043_v44, %v1662_v43 }
  0x40   :  { %822 = vmatpush.bf16.msrb.mxu3 %v1443_v3  ;;  %v1994_v53 = vld [vmem:[#allocation5 + $0xa4] sm:$0xf]  ;;  %v1472_v55 = vld [vmem:[#allocation5 + $0xa8] sm:$0xf0]  ;;  %v1411_v56 = vor.u32 %v1978_v46, %v1408_v47  ;;  %v1654_v57 = vld [vmem:[#allocation5 + $0x210] sm:$0xf]  ;;  %v1727_v61 = vor.u32 %v2059_v51, %v1726_v50 }
  0x41   :  { %794 = vmatpush.bf16.msrb.mxu1 %v1759_v7  ;;  %v2041_v58 = vld [vmem:[#allocation5 + $0x214] sm:$0xf0]  ;;  %v1976_v59 = vld [vmem:[#allocation5 + $0x14] sm:$0xf]  ;;  %v1400_v62 = vld [vmem:[#allocation5 + $0x18] sm:$0xf0]  ;;  %v1475_v2 = vor.u32 %v1994_v53, %v1472_v55 }
  0x42   :  { %781 = vmatpush.bf16.msrb.mxu0 %v1687_v13  ;;  %v1718_v0 = vld [vmem:[#allocation5 + $0x290] sm:$0xf]  ;;  %v2057_v1 = vld [vmem:[#allocation5 + $0x294] sm:$0xf0]  ;;  %v1992_v3 = vld [vmem:[#allocation5 + $0x94] sm:$0xf]  ;;  %v1655_v7 = vor.u32 %v2041_v58, %v1654_v57  ;;  %v1403_v11 = vor.u32 %v1976_v59, %v1400_v62 }
  0x43   :  { %836 = vmatpush.bf16.msra.mxu2 %v1507_v10  ;;  %v1464_v5 = vld [vmem:[#allocation5 + $0x98] sm:$0xf0]  ;;  %v1646_v6 = vld [vmem:[#allocation5 + $0x200] sm:$0xf]  ;;  %v2039_v8 = vld [vmem:[#allocation5 + $0x204] sm:$0xf0]  ;;  %v1719_v15 = vor.u32 %v2057_v1, %v1718_v0 }
  0x44   :  { %823 = vmatpush.bf16.msrb.mxu3 %v1435_v16  ;;  %v1974_v9 = vld [vmem:[#allocation5 + $0x4] sm:$0xf]  ;;  %v1392_v10 = vld [vmem:[#allocation5 + $0x8] sm:$0xf0]  ;;  %v2020_v12 = vld [vmem:[#allocation5 + $0x174] sm:$0xf]  ;;  %v1647_v23 = vor.u32 %v2039_v8, %v1646_v6 }
  0x45   :  { %795 = vmatpush.bf16.msrb.mxu1 %v1751_v19  ;;  %v1576_v13 = vld [vmem:[#allocation5 + $0x178] sm:$0xf0]  ;;  %v2052_v14 = vld [vmem:[#allocation5 + $0x274] sm:$0xf]  ;;  %v1710_v17 = vld [vmem:[#allocation5 + $0x280] sm:$0xf]  ;;  %v1467_v19 = vor.u32 %v1992_v3, %v1464_v5  ;;  %v1395_v27 = vor.u32 %v1974_v9, %v1392_v10 }
  0x46   :  { %782 = vmatpush.bf16.msrb.mxu0 %v1679_v25  ;;  %v1704_v16 = vld [vmem:[#allocation5 + $0x278] sm:$0xf0]  ;;  %v2055_v18 = vld [vmem:[#allocation5 + $0x284] sm:$0xf0]  ;;  %v108_v20 = vld [vmem:[#allocation2 + $0x20] sm:$0xff] }
  0x47   :  { %837 = vmatpush.bf16.msra.mxu2 %v1499_v22  ;;  %v115_v21 = vld [vmem:[#allocation2 + $0x58] sm:$0xff]  ;;  %v1990_v22 = vld [vmem:[#allocation5 + $0x84] sm:$0xf]  ;;  %v2036_v25 = vld [vmem:[#allocation5 + $0x1f4] sm:$0xf]  ;;  %v1707_v32 = vor.u32 %v2052_v14, %v1704_v16  ;;  %v1711_v33 = vor.u32 %v2055_v18, %v1710_v17 }
  0x48   :  { %824 = vmatpush.bf16.msrb.mxu3 %v1427_v28  ;;  %v1456_v24 = vld [vmem:[#allocation5 + $0x88] sm:$0xf0]  ;;  %v1640_v26 = vld [vmem:[#allocation5 + $0x1f8] sm:$0xf0]  ;;  %v1579_v28 = vor.u32 %v2020_v12, %v1576_v13  ;;  %v2068_v29 = vld [vmem:[#allocation5 + $0x2f4] sm:$0xf]  ;;  %v2384_v37 = vpack.c.bf16 %v115_v21, %v108_v20 }
  0x49   :  { %796 = vmatpush.bf16.msrb.mxu1 %v1743_v31  ;;  %v1768_v30 = vld [vmem:[#allocation5 + $0x2f8] sm:$0xf0]  ;;  %v116_v34 = vld [vmem:[#allocation2 + $0x60] sm:$0xff]  ;;  %v1568_v36 = vld [vmem:[#allocation5 + $0x168] sm:$0xf0]  ;;  %v1459_v38 = vor.u32 %v1990_v22, %v1456_v24  ;;  %v1643_v41 = vor.u32 %v2036_v25, %v1640_v26 }
  0x4a   :  { %783 = vmatpush.bf16.msrb.mxu0 %v1671_v39  ;;  %1780 = vmatmul.msk.bf16.vlgmr.msrb.gmra.mxu2 %vm719_vm0, %v2380_v48  ;;  %v109_v31 = vld [vmem:[#allocation2 + $0x28] sm:$0xff]  ;;  %v2050_v39 = vld [vmem:[#allocation5 + $0x264] sm:$0xf]  ;;  %v1696_v40 = vld [vmem:[#allocation5 + $0x268] sm:$0xf0] }
  0x4b   :  { %838 = vmatpush.bf16.msra.mxu2 %v1491_v35  ;;  %v2018_v35 = vld [vmem:[#allocation5 + $0x164] sm:$0xf]  ;;  %v2386_v44 = vpack.c.bf16 %v116_v34, %v109_v31  ;;  %v1632_v46 = vld [vmem:[#allocation5 + $0x1e8] sm:$0xf0]  ;;  %v1699_v50 = vor.u32 %v2050_v39, %v1696_v40  ;;  %v2016_v51 = vld [vmem:[#allocation5 + $0x154] sm:$0xf] }
  0x4c   :  { %825 = vmatpush.bf16.msrb.mxu3 %v1419_v42  ;;  %v1771_v42 = vor.u32 %v2068_v29, %v1768_v30  ;;  %v2034_v43 = vld [vmem:[#allocation5 + $0x1e4] sm:$0xf]  ;;  %v2048_v53 = vld [vmem:[#allocation5 + $0x254] sm:$0xf]  ;;  %v1688_v55 = vld [vmem:[#allocation5 + $0x258] sm:$0xf0] }
  0x4d   :  { %797 = vmatpush.bf16.msrb.mxu1 %v1735_v45  ;;  %v1571_v45 = vor.u32 %v2018_v35, %v1568_v36  ;;  %v2066_v47 = vld [vmem:[#allocation5 + $0x2e4] sm:$0xf]  ;;  %v2032_v58 = vld [vmem:[#allocation5 + $0x1d4] sm:$0xf]  ;;  %v1752_v0 = vld [vmem:[#allocation5 + $0x2d8] sm:$0xf0]  ;;  %v1691_v1 = vor.u32 %v2048_v53, %v1688_v55 }
  0x4e   :  { %784 = vmatpush.bf16.msrb.mxu0 %v1663_v52  ;;  %v1560_v52 = vld [vmem:[#allocation5 + $0x158] sm:$0xf0]  ;;  %v2064_v62 = vld [vmem:[#allocation5 + $0x2d4] sm:$0xf]  ;;  %v1552_v3 = vld [vmem:[#allocation5 + $0x148] sm:$0xf0] }
  0x4f   :  { %839 = vmatpush.bf16.msra.mxu2 %v1483_v49  ;;  %v1760_v49 = vld [vmem:[#allocation5 + $0x2e8] sm:$0xf0]  ;;  %v1563_v59 = vor.u32 %v2016_v51, %v1560_v52  ;;  %v2046_v5 = vld [vmem:[#allocation5 + $0x244] sm:$0xf]  ;;  %v1755_v8 = vor.u32 %v2064_v62, %v1752_v0  ;;  %v1544_v16 = vld [vmem:[#allocation5 + $0x138] sm:$0xf0] }
  0x50   :  { %826 = vmatpush.bf16.msrb.mxu3 %v1411_v56  ;;  %v1635_v56 = vor.u32 %v2034_v43, %v1632_v46  ;;  %v1763_v57 = vor.u32 %v2066_v47, %v1760_v49  ;;  %v1680_v6 = vld [vmem:[#allocation5 + $0x248] sm:$0xf0]  ;;  %v2030_v9 = vld [vmem:[#allocation5 + $0x1c4] sm:$0xf]  ;;  %v2044_v17 = vld [vmem:[#allocation5 + $0x234] sm:$0xf] }
  0x51   :  { %798 = vmatpush.bf16.msrb.mxu1 %v1727_v61  ;;  %v1624_v61 = vld [vmem:[#allocation5 + $0x1d8] sm:$0xf0]  ;;  %v1616_v10 = vld [vmem:[#allocation5 + $0x1c8] sm:$0xf0]  ;;  %v2062_v12 = vld [vmem:[#allocation5 + $0x2c4] sm:$0xf]  ;;  %v1683_v14 = vor.u32 %v2046_v5, %v1680_v6 }
  0x52   :  { %785 = vmatpush.bf16.msrb.mxu0 %v1655_v7  ;;  %v1627_v7 = vor.u32 %v2032_v58, %v1624_v61  ;;  %v1744_v13 = vld [vmem:[#allocation5 + $0x2c8] sm:$0xf0]  ;;  %v1619_v18 = vor.u32 %v2030_v9, %v1616_v10  ;;  %v1608_v21 = vld [vmem:[#allocation5 + $0x1b8] sm:$0xf0]  ;;  %v2060_v22 = vld [vmem:[#allocation5 + $0x2b4] sm:$0xf] }
  0x53   :  { %840 = vmatpush.bf16.msra.mxu2 %v1475_v2  ;;  %v2014_v2 = vld [vmem:[#allocation5 + $0x144] sm:$0xf]  ;;  %v1536_v26 = vld [vmem:[#allocation5 + $0x128] sm:$0xf0]  ;;  %v1528_v39 = vld [vmem:[#allocation5 + $0x118] sm:$0xf0] }
  0x54   :  { %827 = vmatpush.bf16.msrb.mxu3 %v1403_v11  ;;  %v1555_v11 = vor.u32 %v2014_v2, %v1552_v3  ;;  %v2010_v25 = vld [vmem:[#allocation5 + $0x124] sm:$0xf]  ;;  %v1728_v35 = vld [vmem:[#allocation5 + $0x2a8] sm:$0xf0]  ;;  %v2040_v40 = vld [vmem:[#allocation5 + $0x214] sm:$0xf] }
  0x55   :  { %799 = vmatpush.bf16.msrb.mxu1 %v1719_v15  ;;  %v2012_v15 = vld [vmem:[#allocation5 + $0x134] sm:$0xf]  ;;  %v2026_v31 = vld [vmem:[#allocation5 + $0x1a4] sm:$0xf]  ;;  %v1592_v47 = vld [vmem:[#allocation5 + $0x198] sm:$0xf0] }
  0x56   :  { %786 = vmatpush.bf16.msrb.mxu0 %v1647_v23  ;;  %v1547_v20 = vor.u32 %v2012_v15, %v1544_v16  ;;  %v1736_v23 = vld [vmem:[#allocation5 + $0x2b8] sm:$0xf0]  ;;  %v2058_v34 = vld [vmem:[#allocation5 + $0x2a4] sm:$0xf]  ;;  %v2056_v49 = vld [vmem:[#allocation5 + $0x294] sm:$0xf] }
  0x57   :  { %841 = vmatpush.bf16.msra.mxu2 %v1467_v19  ;;  %v2028_v19 = vld [vmem:[#allocation5 + $0x1b4] sm:$0xf]  ;;  %v1739_v30 = vor.u32 %v2060_v22, %v1736_v23  ;;  %v1731_v43 = vor.u32 %v2058_v34, %v1728_v35  ;;  %v2006_v52 = vld [vmem:[#allocation5 + $0x104] sm:$0xf]  ;;  %v1520_v53 = vld [vmem:[#allocation5 + $0x108] sm:$0xf0] }
  0x58   :  { %828 = vmatpush.bf16.msrb.mxu3 %v1395_v27  ;;  %v2042_v27 = vld [vmem:[#allocation5 + $0x224] sm:$0xf]  ;;  %v1611_v29 = vor.u32 %v2028_v19, %v1608_v21  ;;  %v1776_v58 = vld [vmem:[#allocation5 + $0x308] sm:$0xf0]  ;;  %v1523_v62 = vor.u32 %v2006_v52, %v1520_v53  ;;  %v1832_v15 = vld [vmem:[#allocation8 + $0x60] sm:$0xf] }
  0x59   :  { %800 = vmatpush.bf16.msrb.mxu1 %v1711_v33  ;;  %787 = vmatmul.bf16.vlgmr.msrb.gmra.mxu0 %v2384_v37  ;;  %v1600_v33 = vld [vmem:[#allocation5 + $0x1a8] sm:$0xf0]  ;;  %v2038_v55 = vld [vmem:[#allocation5 + $0x204] sm:$0xf]  ;;  %v2085_v16 = vld [vmem:[#allocation8 + $0x64] sm:$0xf0] }
  0x5a   :  { %849 = vmatpush.bf16.msra.mxu0 %v1579_v28  ;;  %v1664_v28 = vld [vmem:[#allocation5 + $0x228] sm:$0xf0]  ;;  %v2022_v0 = vld [vmem:[#allocation5 + $0x184] sm:$0xf]  ;;  %v2081_v21 = vld [vmem:[#allocation8 + $0x44] sm:$0xf0] }
  0x5b   :  { %842 = vmatpush.bf16.msra.mxu2 %v1459_v38  ;;  %829 = vmatmul.bf16.vlgmr.msrb.gmra.mxu3 %v2370_v60  ;;  %v1747_v60 = vor.u32 %v2062_v12, %v1744_v13  ;;  %v1667_v36 = vor.u32 %v2042_v27, %v1664_v28  ;;  %v2008_v38 = vld [vmem:[#allocation5 + $0x114] sm:$0xf]  ;;  %v2054_v3 = vld [vmem:[#allocation5 + $0x284] sm:$0xf]  ;;  %v1712_v5 = vld [vmem:[#allocation5 + $0x288] sm:$0xf0] }
  0x5c   :  { %877 = vmatpush.bf16.msra.mxu3 %v1707_v32  ;;  %801 = vmatmul.bf16.vlgmr.msrb.gmra.mxu1 %v2386_v44  ;;  %v1539_v32 = vor.u32 %v2010_v25, %v1536_v26  ;;  %v1531_v46 = vor.u32 %v2008_v38, %v1528_v39  ;;  %v1840_v9 = vld [vmem:[#allocation8 + $0x70] sm:$0xf]  ;;  %v2087_v10 = vld [vmem:[#allocation8 + $0x74] sm:$0xf0]  ;;  %v1842_v13 = vld [vmem:[#allocation8 + $0x78] sm:$0xf0] }
  0x5d   :  { %863 = vmatpush.bf16.msra.mxu1 %v1643_v41  ;;  %v1656_v41 = vld [vmem:[#allocation5 + $0x218] sm:$0xf0]  ;;  %v1841_v12 = vor.u32 %v2087_v10, %v1840_v9  ;;  %v2080_v22 = vld [vmem:[#allocation8 + $0x44] sm:$0xf]  ;;  %v1808_v26 = vld [vmem:[#allocation8 + $0x30] sm:$0xf] }
  0x5e   :  { %850 = vmatpush.bf16.msra.mxu0 %v1571_v45  ;;  %843 = vmatmul.bf16.vlgmr.msra.gmra.mxu2 %v2374_v4  ;;  %v1672_v4 = vld [vmem:[#allocation5 + $0x238] sm:$0xf0]  ;;  %v2024_v45 = vld [vmem:[#allocation5 + $0x194] sm:$0xf]  ;;  %v1659_v51 = vor.u32 %v2040_v40, %v1656_v41  ;;  %v2079_v27 = vld [vmem:[#allocation8 + $0x34] sm:$0xf0] }
  0x5f   :  { %891 = vmatpush.bf16.msrb.mxu2 %v1771_v42  ;;  %v1675_v24 = vor.u32 %v2044_v17, %v1672_v4  ;;  %v1603_v42 = vor.u32 %v2026_v31, %v1600_v33  ;;  %v2084_v17 = vld [vmem:[#allocation8 + $0x64] sm:$0xf]  ;;  %v2078_v28 = vld [vmem:[#allocation8 + $0x34] sm:$0xf]  ;;  %v2077_v33 = vld [vmem:[#allocation8 + $0x24] sm:$0xf0] }
  0x60   :  { %878 = vmatpush.bf16.msra.mxu3 %v1699_v50  ;;  %v1720_v50 = vld [vmem:[#allocation5 + $0x298] sm:$0xf0]  ;;  %v2076_v34 = vld [vmem:[#allocation8 + $0x24] sm:$0xf]  ;;  %v1792_v39 = vld [vmem:[#allocation8 + $0x10] sm:$0xf] }
  0x61   :  { %864 = vmatpush.bf16.msra.mxu1 %v1635_v56  ;;  %v1648_v56 = vld [vmem:[#allocation5 + $0x208] sm:$0xf0]  ;;  %v1723_v61 = vor.u32 %v2056_v49, %v1720_v50  ;;  %v2074_v41 = vld [vmem:[#allocation8 + $0x14] sm:$0xf]  ;;  %v1784_v50 = vld [vmem:[#allocation8] sm:$0xf] }
  0x62   :  { %851 = vmatpush.bf16.msra.mxu0 %v1563_v59  ;;  %v1595_v59 = vor.u32 %v2024_v45, %v1592_v47  ;;  %v1651_v2 = vor.u32 %v2038_v55, %v1648_v56  ;;  %v2075_v40 = vld [vmem:[#allocation8 + $0x14] sm:$0xf0]  ;;  %v2072_v52 = vld [vmem:[#allocation8 + $0x4] sm:$0xf]  ;;  %v1786_v55 = vld [vmem:[#allocation8 + $0x8] sm:$0xf0] }
  0x63   :  { %892 = vmatpush.bf16.msrb.mxu2 %v1763_v57  ;;  %v2070_v57 = vld [vmem:[#allocation5 + $0x304] sm:$0xf]  ;;  %v1906_v9 = vld [vmem:[#allocation8 + $0xf8] sm:$0xf0] }
  0x64   :  { %879 = vmatpush.bf16.msra.mxu3 %v1691_v1  ;;  %v1584_v1 = vld [vmem:[#allocation5 + $0x188] sm:$0xf0]  ;;  %v1779_v6 = vor.u32 %v2070_v57, %v1776_v58  ;;  %v1789_v57 = vor.u32 %v2072_v52, %v1786_v55  ;;  %v1864_v52 = vld [vmem:[#allocation8 + $0xa0] sm:$0xf] }
  0x65   :  { %865 = vmatpush.bf16.msra.mxu1 %v1627_v7  ;;  %v1587_v7 = vor.u32 %v2022_v0, %v1584_v1 }
  0x66   :  { %852 = vmatpush.bf16.msra.mxu0 %v1555_v11  ;;  %v2086_v11 = vld [vmem:[#allocation8 + $0x74] sm:$0xf] }
  0x67   :  { %893 = vmatpush.bf16.msrb.mxu2 %v1755_v8  ;;  %v1715_v8 = vor.u32 %v2054_v3, %v1712_v5  ;;  %v1904_v5 = vld [vmem:[#allocation8 + $0xf0] sm:$0xf] }
  0x68   :  { %880 = vmatpush.bf16.msra.mxu3 %v1683_v14  ;;  %v1845_v14 = vor.u32 %v2086_v11, %v1842_v13  ;;  %v1896_v13 = vld [vmem:[#allocation8 + $0xe0] sm:$0xf] }
  0x69   :  { %866 = vmatpush.bf16.msra.mxu1 %v1619_v18  ;;  %v2083_v18 = vld [vmem:[#allocation8 + $0x54] sm:$0xf0] }
  0x6a   :  { %853 = vmatpush.bf16.msra.mxu0 %v1547_v20  ;;  %v1816_v20 = vld [vmem:[#allocation8 + $0x40] sm:$0xf] }
  0x6b   :  { %894 = vmatpush.bf16.msrb.mxu2 %v1747_v60  ;;  %v1826_v60 = vld [vmem:[#allocation8 + $0x58] sm:$0xf0]  ;;  %v1817_v23 = vor.u32 %v2081_v21, %v1816_v20  ;;  %v2098_v20 = vld [vmem:[#allocation8 + $0xd4] sm:$0xf] }
  0x6c   :  { %881 = vmatpush.bf16.msra.mxu3 %v1675_v24  ;;  %v1818_v24 = vld [vmem:[#allocation8 + $0x48] sm:$0xf0] }
  0x6d   :  { %867 = vmatpush.bf16.msra.mxu1 %v1611_v29  ;;  %v1821_v25 = vor.u32 %v2080_v22, %v1818_v24  ;;  %v1809_v29 = vor.u32 %v2079_v27, %v1808_v26  ;;  %v1880_v27 = vld [vmem:[#allocation8 + $0xc0] sm:$0xf] }
  0x6e   :  { %854 = vmatpush.bf16.msra.mxu0 %v1539_v32  ;;  %v1800_v32 = vld [vmem:[#allocation8 + $0x20] sm:$0xf] }
  0x6f   :  { %895 = vmatpush.bf16.msrb.mxu2 %v1739_v30  ;;  %v1810_v30 = vld [vmem:[#allocation8 + $0x38] sm:$0xf0]  ;;  %v1801_v35 = vor.u32 %v2077_v33, %v1800_v32  ;;  %v1882_v32 = vld [vmem:[#allocation8 + $0xc8] sm:$0xf0] }
  0x70   :  { %882 = vmatpush.bf16.msra.mxu3 %v1667_v36  ;;  %v1813_v31 = vor.u32 %v2078_v28, %v1810_v30  ;;  %v1802_v36 = vld [vmem:[#allocation8 + $0x28] sm:$0xf0]  ;;  %v2097_v28 = vld [vmem:[#allocation8 + $0xc4] sm:$0xf0] }
  0x71   :  { %868 = vmatpush.bf16.msra.mxu1 %v1603_v42  ;;  %v1805_v38 = vor.u32 %v2076_v34, %v1802_v36  ;;  %v1793_v42 = vor.u32 %v2075_v40, %v1792_v39  ;;  %v1881_v30 = vor.u32 %v2097_v28, %v1880_v27  ;;  %v1872_v40 = vld [vmem:[#allocation8 + $0xb0] sm:$0xf] }
  0x72   :  { %855 = vmatpush.bf16.msra.mxu0 %v1531_v46  ;;  %v2398_v46 = vld [vmem:[#allocation7] sm:$0x3] }
  0x73   :  { %896 = vmatpush.bf16.msrb.mxu2 %v1731_v43  ;;  %v1794_v43 = vld [vmem:[#allocation8 + $0x18] sm:$0xf0]  ;;  %v225_v58 = vperm.slane %v2398_v46, 0 }
  0x74   :  { %883 = vmatpush.bf16.msra.mxu3 %v1659_v51  ;;  %v1797_v45 = vor.u32 %v2074_v41, %v1794_v43  ;;  %v2073_v51 = vld [vmem:[#allocation8 + $0x4] sm:$0xf0]  ;;  %v2095_v41 = vld [vmem:[#allocation8 + $0xb4] sm:$0xf0] }
  0x75   :  { %869 = vmatpush.bf16.msra.mxu1 %v1595_v59  ;;  %v1785_v53 = vor.u32 %v2073_v51, %v1784_v50  ;;  %v1873_v43 = vor.u32 %v2095_v41, %v1872_v40  ;;  %v2109_v40 = vld [vmem:[#allocation10 + $0x28] sm:$0xff] }
  0x76   :  { %856 = vmatpush.bf16.msra.mxu0 %v1523_v62  ;;  %v2117_v41 = vld [vmem:[#allocation10 + $0x68] sm:$0xff] }
  0x77   :  { %897 = vmatpush.bf16.msrb.mxu2 %v1723_v61 }
  0x78   :  { %884 = vmatpush.bf16.msra.mxu3 %v1651_v2 }
  0x79   :  { %870 = vmatpush.bf16.msra.mxu1 %v1587_v7  ;;  %857 = vmatmul.bf16.vlgmr.msra.gmra.mxu0 %v2368_v54  ;;  %v1833_v54 = vor.u32 %v2085_v16, %v1832_v15  ;;  %v2102_v7 = vld [vmem:[#allocation8 + $0xf4] sm:$0xf]  ;;  %v2100_v15 = vld [vmem:[#allocation8 + $0xe4] sm:$0xf] }
  0x7a   :  { %912 = vmatpush.bf16.msrb.mxu0 %v1779_v6  ;;  %v2103_v6 = vld [vmem:[#allocation8 + $0xf4] sm:$0xf0]  ;;  %v1909_v11 = vor.u32 %v2102_v7, %v1906_v9  ;;  %v1848_v7 = vld [vmem:[#allocation8 + $0x80] sm:$0xf]  ;;  %v2088_v9 = vld [vmem:[#allocation8 + $0x84] sm:$0xf] }
  0x7b   :  { %885 = vmatmul.bf16.vlgmr.msra.gmra.mxu3 %v2384_v37  ;;  %898 = vmatpush.bf16.msrb.mxu2 %v1715_v8  ;;  %v1834_v37 = vld [vmem:[#allocation8 + $0x68] sm:$0xf0]  ;;  %v1905_v8 = vor.u32 %v2103_v6, %v1904_v5 }
  0x7c   :  { %871 = vmatmul.bf16.vlgmr.msra.gmra.mxu1 %v2372_v63  ;;  %v1837_v4 = vor.u32 %v2084_v17, %v1834_v37  ;;  %v1824_v63 = vld [vmem:[#allocation8 + $0x50] sm:$0xf]  ;;  %v1898_v37 = vld [vmem:[#allocation8 + $0xe8] sm:$0xf0] }
  0x7d   :  { %1123 = vmatpush.bf16.msrb.mxu1 %v1841_v12  ;;  %1137 = vmatpush.bf16.msrb.mxu3 %v1905_v8  ;;  %v2089_v8 = vld [vmem:[#allocation8 + $0x84] sm:$0xf0] }
  0x7e   :  { %899 = vmatmul.bf16.vlgmr.msrb.gmra.mxu2 %v2386_v44  ;;  %1151 = vmatpush.bf16.msra.mxu0 %v1845_v14  ;;  %v2082_v44 = vld [vmem:[#allocation8 + $0x54] sm:$0xf]  ;;  %v2101_v14 = vld [vmem:[#allocation8 + $0xe4] sm:$0xf0] }
  0x7f   :  { %v1829_v19 = vor.u32 %v2082_v44, %v1826_v60  ;;  %1165 = vmatpush.bf16.msra.mxu2 %v1909_v11  ;;  %v1850_v11 = vld [vmem:[#allocation8 + $0x88] sm:$0xf0] }
  0x81   :  { %1124 = vmatpush.bf16.msrb.mxu1 %v1833_v54  ;;  %v1897_v54 = vor.u32 %v2101_v14, %v1896_v13  ;;  %v226_v13 = vperm.slane %v2398_v46, 1 }
  0x82   :  { %1152 = vmatpush.bf16.msra.mxu0 %v1837_v4 }
  0x83   :  { %1138 = vmatpush.bf16.msrb.mxu3 %v1897_v54 }
  0x86   :  { %1153 = vmatpush.bf16.msra.mxu0 %v1829_v19  ;;  %v2099_v19 = vld [vmem:[#allocation8 + $0xd4] sm:$0xf0] }
  0x89   :  { %1781 = vmatmul.msk.bf16.vlgmr.msrb.gmra.mxu0 %vm719_vm0, %v2380_v48  ;;  %v1825_v48 = vor.u32 %v2083_v18, %v1824_v63  ;;  %v1901_v63 = vor.u32 %v2100_v15, %v1898_v37 }
  0x8a   :  { %1154 = vmatpush.bf16.msra.mxu0 %v1821_v25 }
  0x8b   :  { %1125 = vmatpush.bf16.msrb.mxu1 %v1825_v48  ;;  %1166 = vmatpush.bf16.msra.mxu2 %v1901_v63  ;;  %v1888_v48 = vld [vmem:[#allocation8 + $0xd0] sm:$0xf] }
  0x8c   :  { %v1889_v22 = vor.u32 %v2099_v19, %v1888_v48 }
  0x8e   :  { %1155 = vmatpush.bf16.msra.mxu0 %v1813_v31  ;;  %1139 = vmatpush.bf16.msrb.mxu3 %v1889_v22  ;;  %v2096_v31 = vld [vmem:[#allocation8 + $0xc4] sm:$0xf] }
  0x8f   :  { %1126 = vmatpush.bf16.msrb.mxu1 %v1817_v23  ;;  %v1890_v23 = vld [vmem:[#allocation8 + $0xd8] sm:$0xf0]  ;;  %v1885_v34 = vor.u32 %v2096_v31, %v1882_v32 }
  0x90   :  { %v1893_v24 = vor.u32 %v2098_v20, %v1890_v23 }
  0x92   :  { %1156 = vmatpush.bf16.msra.mxu0 %v1805_v38  ;;  %1167 = vmatpush.bf16.msra.mxu2 %v1893_v24 }
  0x93   :  { %1127 = vmatpush.bf16.msrb.mxu1 %v1809_v29  ;;  %1140 = vmatpush.bf16.msrb.mxu3 %v1881_v30 }
  0x96   :  { %1157 = vmatpush.bf16.msra.mxu0 %v1797_v45  ;;  %1168 = vmatpush.bf16.msra.mxu2 %v1885_v34  ;;  %v1874_v45 = vld [vmem:[#allocation8 + $0xb8] sm:$0xf0] }
  0x97   :  { %1128 = vmatpush.bf16.msrb.mxu1 %v1801_v35  ;;  %1141 = vmatpush.bf16.msrb.mxu3 %v1873_v43  ;;  %v2116_v43 = vld [vmem:[#allocation10 + $0x60] sm:$0xff] }
  0x9a   :  { %1158 = vmatpush.bf16.msra.mxu0 %v1789_v57  ;;  %v1866_v57 = vld [vmem:[#allocation8 + $0xa8] sm:$0xf0] }
  0x9b   :  { %1129 = vmatpush.bf16.msrb.mxu1 %v1793_v42  ;;  %v2094_v42 = vld [vmem:[#allocation8 + $0xb4] sm:$0xf] }
  0x9f   :  { %1130 = vmatpush.bf16.msrb.mxu1 %v1785_v53  ;;  %v2093_v53 = vld [vmem:[#allocation8 + $0xa4] sm:$0xf0] }
  0xa0   :  { %v1865_v55 = vor.u32 %v2093_v53, %v1864_v52  ;;  %v2113_v52 = vld [vmem:[#allocation10 + $0x48] sm:$0xff]  ;;  %v2104_v53 = vld [vmem:[#allocation10] sm:$0xff] }
  0xa2   :  { %1142 = vmatpush.bf16.msrb.mxu3 %v1865_v55  ;;  %v2112_v55 = vld [vmem:[#allocation10 + $0x40] sm:$0xff] }
  0xb6   :  { %v732_v47 = vpop.f32.mrf.mxu0 }
  0xb7   :  { %v733_v59 = vadd.f32 %v732_v47, %v225_v58 }
  0xb9   :  { %v746_v56 = vpop.f32.mrf.mxu1 }
  0xba   :  { %v747_v0 = vadd.f32 %v746_v56, %v733_v59  ;;  %v2092_v56 = vld [vmem:[#allocation8 + $0xa4] sm:$0xf] }
  0xbb   :  { %v1869_v59 = vor.u32 %v2092_v56, %v1866_v57 }
  0xbd   :  { %v760_v49 = vpop.f32.mrf.mxu2 }
  0xbe   :  { %v734_v61 = vpop.f32.mrf.mxu0  ;;  %v774_v1 = vpop.f32.mrf.mxu3  ;;  %v761_v10 = vadd.f32 %v760_v49, %v747_v0  ;;  %v1877_v49 = vor.u32 %v2094_v42, %v1874_v45  ;;  %v2091_v0 = vld [vmem:[#allocation8 + $0x94] sm:$0xf0]  ;;  %v2108_v42 = vld [vmem:[#allocation10 + $0x20] sm:$0xff] }
  0xbf   :  { %v735_v3 = vadd.f32 %v734_v61, %v225_v58  ;;  %v2107_v45 = vld [vmem:[#allocation10 + $0x18] sm:$0xff] }
  0xc0   :  { %v775_v4 = vadd.f32 %v774_v1, %v761_v10  ;;  %1169 = vmatpush.bf16.msra.mxu2 %v1877_v49  ;;  %v2090_v1 = vld [vmem:[#allocation8 + $0x94] sm:$0xf]  ;;  %v1849_v10 = vor.u32 %v2089_v8, %v1848_v7 }
  0xc1   :  { %v748_v2 = vpop.f32.mrf.mxu1  ;;  %v2106_v49 = vld [vmem:[#allocation10 + $0x10] sm:$0xff] }
  0xc2   :  { %v749_v12 = vadd.f32 %v748_v2, %v735_v3  ;;  %v1858_v3 = vld [vmem:[#allocation8 + $0x98] sm:$0xf0] }
  0xc3   :  { %v1861_v6 = vor.u32 %v2090_v1, %v1858_v3 }
  0xc4   :  { %1170 = vmatpush.bf16.msra.mxu2 %v1869_v59 }
  0xc5   :  { %v762_v62 = vpop.f32.mrf.mxu2 }
  0xc6   :  { %v763_v44 = vadd.f32 %v762_v62, %v749_v12  ;;  %v776_v21 = vpop.f32.mrf.mxu3  ;;  %v1856_v62 = vld [vmem:[#allocation8 + $0x90] sm:$0xf]  ;;  %v1853_v12 = vor.u32 %v2088_v9, %v1850_v11 }
  0xc7   :  { %v1857_v2 = vor.u32 %v2091_v0, %v1856_v62 }
  0xc8   :  { %v777_v25 = vadd.f32 %v776_v21, %v763_v44  ;;  %1171 = vmatpush.bf16.msra.mxu2 %v1861_v6 }
  0xc9   :  { %1143 = vmatpush.bf16.msrb.mxu3 %v1857_v2 }
  0xcc   :  { %1172 = vmatpush.bf16.msra.mxu2 %v1853_v12 }
  0xcd   :  { %v816_v17 = vpop.f32.mrf.mxu2  ;;  %1144 = vmatpush.bf16.msrb.mxu3 %v1849_v10 }
  0xd5   :  { %v818_v36 = vpop.f32.mrf.mxu2 }
  0xd6   :  { %v788_v16 = vpop.f32.mrf.mxu0 }
  0xd7   :  { %v789_v60 = vadd.f32 %v788_v16, %v775_v4 }
  0xd9   :  { %v802_v18 = vpop.f32.mrf.mxu1 }
  0xda   :  { %v803_v26 = vadd.f32 %v802_v18, %v789_v60 }
  0xdc   :  { %v817_v38 = vadd.f32 %v816_v17, %v803_v26 }
  0xde   :  { %v790_v29 = vpop.f32.mrf.mxu0  ;;  %v919_v50 = vmax.f32 %v817_v38, 0.0  ;;  %v830_v61 = vpop.f32.mrf.mxu3  ;;  %v2110_v38 = vld [vmem:[#allocation10 + $0x30] sm:$0xff] }
  0xdf   :  { %v791_v33 = vadd.f32 %v790_v29, %v777_v25  ;;  %v831_v17 = vadd.f32 %v830_v61, %v226_v13 }
  0xe1   :  { %v804_v35 = vpop.f32.mrf.mxu1  ;;  %v844_v5 = vpop.f32.mrf.mxu2 }
  0xe2   :  { %v805_v39 = vadd.f32 %v804_v35, %v791_v33  ;;  %v845_v37 = vadd.f32 %v844_v5, %v831_v17  ;;  %v2111_v35 = vld [vmem:[#allocation10 + $0x38] sm:$0xff] }
  0xe3   :  { %1317 = vmatpush.bf16.msra.mxu1 %v2111_v35 }
  0xe4   :  { %v819_v47 = vadd.f32 %v818_v36, %v805_v39  ;;  %v2119_v36 = vld [vmem:[#allocation10 + $0x78] sm:$0xff]  ;;  %v2118_v39 = vld [vmem:[#allocation10 + $0x70] sm:$0xff] }
  0xe5   :  { %1331 = vmatpush.bf16.msra.mxu3 %v2119_v36 }
  0xe6   :  { %v921_v51 = vmax.f32 %v819_v47, 0.0  ;;  %v832_v14 = vpop.f32.mrf.mxu3  ;;  %v2115_v47 = vld [vmem:[#allocation10 + $0x58] sm:$0xff] }
  0xe7   :  { %v833_v4 = vadd.f32 %v832_v14, %v226_v13  ;;  %1318 = vmatpush.bf16.msra.mxu1 %v2110_v38 }
  0xe8   :  { %v923_v58 = vpack.c.bf16 %v921_v51, %v919_v50  ;;  %v2114_v50 = vld [vmem:[#allocation10 + $0x50] sm:$0xff]  ;;  %v2105_v51 = vld [vmem:[#allocation10 + $0x8] sm:$0xff] }
  0xe9   :  { %v846_v16 = vpop.f32.mrf.mxu2  ;;  %1332 = vmatpush.bf16.msra.mxu3 %v2118_v39 }
  0xea   :  { %1131 = vmatmul.bf16.vlgmr.msrb.gmra.mxu1 %v923_v58  ;;  %1159 = vmatmul.bf16.vlgmr.msra.gmra.mxu0 %v923_v58  ;;  %v847_v60 = vadd.f32 %v846_v16, %v833_v4  ;;  %v957_v58 = vld [vmem:[%s2418_s4] sm:$0x3] }
  0xeb   :  { %1319 = vmatpush.bf16.msra.mxu1 %v2109_v40  ;;  %v959_v62 = vperm.slane %v957_v58, 0  ;;  %v960_v0 = vperm.slane %v957_v58, 1 }
  0xed   :  { %1333 = vmatpush.bf16.msra.mxu3 %v2117_v41 }
  0xef   :  { %1320 = vmatpush.bf16.msra.mxu1 %v2108_v42 }
  0xf1   :  { %1334 = vmatpush.bf16.msra.mxu3 %v2116_v43 }
  0xf3   :  { %1321 = vmatpush.bf16.msra.mxu1 %v2107_v45 }
  0xf5   :  { %1335 = vmatpush.bf16.msra.mxu3 %v2115_v47 }
  0xf6   :  { %v858_v15 = vpop.f32.mrf.mxu0 }
  0xf7   :  { %v859_v48 = vadd.f32 %v858_v15, %v845_v37  ;;  %1322 = vmatpush.bf16.msra.mxu1 %v2106_v49 }
  0xf9   :  { %v872_v54 = vpop.f32.mrf.mxu1  ;;  %1336 = vmatpush.bf16.msra.mxu3 %v2114_v50 }
  0xfa   :  { %v873_v21 = vadd.f32 %v872_v54, %v859_v48 }
  0xfb   :  { %1323 = vmatpush.bf16.msra.mxu1 %v2105_v51 }
  0xfd   :  { %1337 = vmatpush.bf16.msra.mxu3 %v2113_v52 }
  0xfe   :  { %v886_v63 = vpop.f32.mrf.mxu3  ;;  %v860_v18 = vpop.f32.mrf.mxu0 }
  0xff   :  { %v861_v19 = vadd.f32 %v860_v18, %v847_v60  ;;  %v887_v24 = vadd.f32 %v886_v63, %v873_v21  ;;  %1324 = vmatpush.bf16.msra.mxu1 %v2104_v53  ;;  %v2137_v63 = vld [vmem:[%s2420_s6] ss:$0 sm:$0xff]  ;;  %s2309_s6 = smov [#allocation11]  }
 0x100   :  { %s1371_s30 = sshll.u32 %s2309_s6, 4  ;;  %s1372_s30 = int_to_ptr.vmem [resolvable:$true] %s1371_s30 }
 0x101   :  { %v900_v44 = vpop.f32.mrf.mxu2  ;;  %v874_v20 = vpop.f32.mrf.mxu1  ;;  %1338 = vmatpush.bf16.msra.mxu3 %v2112_v55 }
 0x102   :  { %v875_v46 = vadd.f32 %v874_v20, %v861_v19  ;;  %v901_v27 = vadd.f32 %v900_v44, %v887_v24 }
 0x106   :  { %v888_v22 = vpop.f32.mrf.mxu3  ;;  %v914_v23 = vpop.f32.mrf.mxu0 }
 0x107   :  { %v889_v25 = vadd.f32 %v888_v22, %v875_v46  ;;  %v915_v28 = vadd.f32 %v914_v23, %v901_v27 }
 0x109   :  { %v902_v26 = vpop.f32.mrf.mxu2  ;;  %v920_v32 = vmax.f32 %v915_v28, 0.0 }
 0x10a   :  { %v903_v29 = vadd.f32 %v902_v26, %v889_v25 }
 0x10e   :  { %v916_v30 = vpop.f32.mrf.mxu0 }
 0x10f   :  { %v917_v31 = vadd.f32 %v916_v30, %v903_v29 }
 0x111   :  { %v922_v33 = vmax.f32 %v917_v31, 0.0 }
 0x113   :  { %v924_v34 = vpack.c.bf16 %v922_v33, %v920_v32 }
 0x115   :  { %1145 = vmatmul.bf16.vlgmr.msrb.gmra.mxu3 %v924_v34  ;;  %1173 = vmatmul.bf16.vlgmr.msra.gmra.mxu2 %v924_v34 }
 0x167   :  { %v1132_v56 = vpop.f32.mrf.mxu1  ;;  %v1160_v57 = vpop.f32.mrf.mxu0 }
 0x168   :  { %v1133_v3 = vadd.f32 %v1132_v56, %v959_v62  ;;  %v1161_v5 = vadd.f32 %v1160_v57, %v960_v0 }
 0x16f   :  { %v1134_v1 = vpop.f32.mrf.mxu1  ;;  %v1162_v2 = vpop.f32.mrf.mxu0 }
 0x170   :  { %v1135_v6 = vadd.f32 %v1134_v1, %v959_v62  ;;  %v1163_v7 = vadd.f32 %v1162_v2, %v960_v0 }
 0x198   :  { %v1146_v59 = vpop.f32.mrf.mxu3  ;;  %v1174_v61 = vpop.f32.mrf.mxu2 }
 0x199   :  { %v1147_v8 = vadd.f32 %v1146_v59, %v1133_v3  ;;  %v1175_v9 = vadd.f32 %v1174_v61, %v1161_v5 }
 0x19b   :  { %v1179_v14 = vmax.f32 %v1147_v8, 0.0  ;;  %v1180_v15 = vmax.f32 %v1175_v9, 0.0 }
 0x1a0   :  { %v1148_v10 = vpop.f32.mrf.mxu3  ;;  %v1176_v11 = vpop.f32.mrf.mxu2 }
 0x1a1   :  { %v1149_v12 = vadd.f32 %v1148_v10, %v1135_v6  ;;  %v1177_v13 = vadd.f32 %v1176_v11, %v1163_v7 }
 0x1a3   :  { %v1181_v16 = vmax.f32 %v1149_v12, 0.0  ;;  %v1182_v17 = vmax.f32 %v1177_v13, 0.0 }
 0x1a5   :  { %v1183_v54 = vpack.c.bf16 %v1181_v16, %v1179_v14  ;;  %v1184_v37 = vpack.c.bf16 %v1182_v17, %v1180_v15 }
 0x1a7   :  { %1325 = vmatmul.bf16.vlgmr.msra.gmra.mxu1 %v1183_v54  ;;  %1339 = vmatmul.bf16.vlgmr.msra.gmra.mxu3 %v1184_v37 }
 0x224   :  { %v1326_v4 = vpop.f32.mrf.mxu1 }
 0x225   :  { %v1327_v18 = vadd.f32 %v2137_v63, %v1326_v4 }
 0x22a   :  { %v1340_v44 = vpop.f32.mrf.mxu3 }
 0x22b   :  { %v1341_v60 = vadd.f32 %v1340_v44, %v1327_v18 }
 0x22c   :  { %v1328_v48 = vpop.f32.mrf.mxu1 }
 0x22d   :  { %1345 = vmax.xlane.f32.xlu0 %v1341_v60  ;;  %v1329_v19 = vadd.f32 %v2137_v63, %v1328_v48 }
 0x232   :  { %v1342_v20 = vpop.f32.mrf.mxu3 }
 0x233   :  { %v1343_v21 = vadd.f32 %v1342_v20, %v1329_v19 }
 0x235   :  { %1347 = vmax.xlane.f32.xlu0 %v1343_v21 }
 0x2a0   :  { %v1346_v22 = vpop.xlane.xlu0 %1345 }
 0x2a1   :  { %v1349_v23 = vsub.f32 %v1341_v60, %v1346_v22 }
 0x2a3   :  { %v1351_v24 = vmul.f32 1.442695, %v1349_v23 }
 0x2a5   :  { %2138 = vpow2.f32 %v1351_v24 }
 0x2a8   :  { %v1348_v46 = vpop.xlane.xlu0 %1347 }
 0x2a9   :  { %v1350_v25 = vsub.f32 %v1343_v21, %v1348_v46 }
 0x2ab   :  { %v2139_v26 = vpop.eup %2138  ;;  %v1353_v27 = vmul.f32 1.442695, %v1350_v25 }
 0x2ac   :  { %1355 = vadd.xlane.f32.xlu1 %v2139_v26 }
 0x2ad   :  { %2140 = vpow2.f32 %v1353_v27 }
 0x2b3   :  { %v2141_v28 = vpop.eup %2140 }
 0x2b4   :  { %1357 = vadd.xlane.f32.xlu1 %v2141_v28 }
 0x31f   :  { %v1356_v29 = vpop.xlane.xlu1 %1355 }
 0x320   :  { %2142 = vrcp.f32 %v1356_v29 }
 0x326   :  { %v2143_v31 = vpop.eup %2142 }
 0x327   :  { %v1358_v30 = vpop.xlane.xlu1 %1357  ;;  %v1361_v34 = vmul.f32 %v2143_v31, %v2139_v26 }
 0x328   :  { %2144 = vrcp.f32 %v1358_v30 }
 0x32e   :  { %v2145_v32 = vpop.eup %2144 }
 0x32f   :  { %v1362_v33 = vmul.f32 %v2145_v32, %v2141_v28 }
 0x331   :  { %v2123_v35 = vpack.c.bf16 %v1362_v33, %v1361_v34 }
 0x333   :  { %2124 = vst [vmem:[#allocation11] sm:$0xff] %v2123_v35  }
 0x334   :  { %1379 = dma.vmem_to_hbm [thread:$0]  %s1372_s30, 128, %s1374_s10, [#allocation4], %s2307_s27, %s2307_s27, %s2308_s28  }
 0x335   :  { %2296 = dma.done.wait [#allocation4], 128  }
 0x336   :  { %2297 = vsyncadd [#allocation4], 4294967168 }
 0x337   :  { %1384 = vsyncpa [#allocation3], 1 }
 0x338   :  { %1385 = vsyncpa [#allocation6], 1 }
 0x339   :  { %1386 = vsyncpa [#allocation9], 1 }
 0x33a   :  { %1387 = vsyncpa [#allocation4], 1 }

</bundles_post_ra>
